<compile_context>
chip_gen: v5e
topology: v5e:2x2
jax: 0.10.0
libtpu: 0.0.40
codegen_flags: <defaults>
</compile_context>

<pallas_src>
import functools

import jax
import jax.numpy as jnp
from jax import lax
from jax.experimental import pallas as pl
from jax.experimental.pallas import tpu as pltpu


def _gelu_exact(x):
    # PyTorch nn.GELU() default == exact (erf-based) GELU.
    return 0.5 * x * (1.0 + lax.erf(x * 0.7071067811865476))


def _flow_kernel(x_ref, t_ref,
                 w_in_ref, b_in_ref, w_t_ref,
                 w_m1_ref, b_m1_ref,
                 w_m2_ref, b_m2_ref,
                 w_out_ref, b_out_ref,
                 o_ref):
    # Feature-major tiles: batch lives on the lane (last) axis.
    x = x_ref[...]                      # (input_dim, bb)  f32
    t = t_ref[...]                      # (1, bb)          f32

    # t_emb (minus its bias) is just an outer product: (hidden,1)*(1,bb).
    # Pure VPU broadcast multiply; b_t is already folded into the layer biases.
    tw = w_t_ref[...] * t               # (hidden, bb)

    # x = GELU(input_layer(x) + t_emb)
    h = jnp.dot(w_in_ref[...], x, preferred_element_type=jnp.float32)
    h = _gelu_exact(h + tw + b_in_ref[...])     # b_in_ref = b_in + b_t, (hidden,1)

    # x = GELU(middle_layer1(x) + t_emb)
    h = jnp.dot(w_m1_ref[...], h, preferred_element_type=jnp.float32)
    h = _gelu_exact(h + tw + b_m1_ref[...])

    # x = GELU(middle_layer2(x) + t_emb)
    h = jnp.dot(w_m2_ref[...], h, preferred_element_type=jnp.float32)
    h = _gelu_exact(h + tw + b_m2_ref[...])

    # output_layer — (output_dim, bb) store is lane-dense.
    out = jnp.dot(w_out_ref[...], h, preferred_element_type=jnp.float32) + b_out_ref[...]
    o_ref[...] = out.astype(o_ref.dtype)


def _round_up(n, m):
    return ((n + m - 1) // m) * m


@functools.partial(jax.jit, static_argnames=("block_b",))
def flow_model_2d(x, t, params, *, block_b=1024):
    """Pallas forward pass of FlowModel2D.

    x: (B, input_dim) float32
    t: (B, 1) float32
    params: PyTorch-layout weights: w_* (out_features, in_features), b_* (out_features,)
    """
    B, input_dim = x.shape
    hidden_dim = params["w_in"].shape[0]
    output_dim = params["w_out"].shape[0]

    # ---- choose a lane-dense batch tile (all static Python arithmetic) ------
    block_b = max(128, _round_up(int(block_b), 128))
    b128 = _round_up(B, 128)
    bb = min(block_b, b128)
    # Keep >= 2 grid steps when the batch allows it (v7x megacore sharding).
    if b128 >= 2 * 128 and bb >= b128:
        bb = _round_up(b128 // 2, 128)
    B_pad = _round_up(B, bb)
    grid = (B_pad // bb,)

    # ---- feature-major (batch-on-lanes) inputs, padded to the tile ----------
    xT = jnp.pad(x.T, ((0, 0), (0, B_pad - B)))        # (input_dim, B_pad)
    tT = jnp.pad(t.T, ((0, 0), (0, B_pad - B)))        # (1, B_pad)

    # ---- weight packing: (out, in) layout; fold b_t into each layer bias ----
    w_in = params["w_in"]                              # (hidden, input_dim)
    w_t = params["w_t"]                                # (hidden, 1)
    w_m1 = params["w_m1"]                              # (hidden, hidden)
    w_m2 = params["w_m2"]                              # (hidden, hidden)
    w_out = params["w_out"]                            # (output_dim, hidden)
    b_t = params["b_t"]
    b_in = (params["b_in"] + b_t).reshape(hidden_dim, 1)
    b_m1 = (params["b_m1"] + b_t).reshape(hidden_dim, 1)
    b_m2 = (params["b_m2"] + b_t).reshape(hidden_dim, 1)
    b_out = params["b_out"].reshape(output_dim, 1)

    def full(arr):
        # whole-array block, resident across the batch grid (constant index map)
        return pl.BlockSpec(arr.shape, lambda i, _a=arr: (0,) * _a.ndim)

    in_specs = [
        pl.BlockSpec((input_dim, bb), lambda i: (0, i)),   # x tile (batch on lanes)
        pl.BlockSpec((1, bb), lambda i: (0, i)),           # t tile
        full(w_in), full(b_in), full(w_t),
        full(w_m1), full(b_m1),
        full(w_m2), full(b_m2),
        full(w_out), full(b_out),
    ]
    out_specs = pl.BlockSpec((output_dim, bb), lambda i: (0, i))

    # Advisory cost estimate for the XLA scheduler.
    flops = 2 * B_pad * hidden_dim * (input_dim + 2 * hidden_dim + output_dim) \
        + 2 * B_pad * hidden_dim
    transc = 3 * B_pad * hidden_dim
    bytes_acc = 4 * (B_pad * (input_dim + 1 + output_dim)
                     + hidden_dim * (input_dim + 1 + 2 * hidden_dim + output_dim)
                     + 3 * hidden_dim + output_dim)

    outT = pl.pallas_call(
        _flow_kernel,
        out_shape=jax.ShapeDtypeStruct((output_dim, B_pad), x.dtype),
        grid_spec=pltpu.PrefetchScalarGridSpec(
            num_scalar_prefetch=0,
            grid=grid,
            in_specs=in_specs,
            out_specs=out_specs,
        ),
        compiler_params=pltpu.CompilerParams(
            dimension_semantics=("parallel",)),
        cost_estimate=pl.CostEstimate(
            flops=int(flops),
            transcendentals=int(transc),
            bytes_accessed=int(bytes_acc)),
    )(xT, tT, w_in, b_in, w_t, w_m1, b_m1, w_m2, b_m2, w_out, b_out)

    return outT[:, :B].T                               # back to (B, output_dim)


def init_params(key, input_dim, hidden_dim, output_dim):
    """Deterministic synthetic init mimicking nn.Linear uniform init.

    PyTorch-native layout: weight (out_features, in_features), bias (out_features,).
    """
    ks = jax.random.split(key, 10)

    def linear(kw, kb, fan_in, fan_out):
        bound = 1.0 / jnp.sqrt(jnp.float32(fan_in))
        w = jax.random.uniform(kw, (fan_out, fan_in), jnp.float32, -bound, bound)
        b = jax.random.uniform(kb, (fan_out,), jnp.float32, -bound, bound)
        return w, b

    w_in, b_in = linear(ks[0], ks[1], input_dim, hidden_dim)
    w_t, b_t = linear(ks[2], ks[3], 1, hidden_dim)
    w_m1, b_m1 = linear(ks[4], ks[5], hidden_dim, hidden_dim)
    w_m2, b_m2 = linear(ks[6], ks[7], hidden_dim, hidden_dim)
    w_out, b_out = linear(ks[8], ks[9], hidden_dim, output_dim)
    return dict(w_in=w_in, b_in=b_in, w_t=w_t, b_t=b_t,
                w_m1=w_m1, b_m1=b_m1, w_m2=w_m2, b_m2=b_m2,
                w_out=w_out, b_out=b_out)


def flow_model_2d_ref(x, t, p):
    """Pure-JAX reference (mirrors the PyTorch forward)."""
    t_emb = t @ p["w_t"].T + p["b_t"]
    h = _gelu_exact(x @ p["w_in"].T + p["b_in"] + t_emb)
    h = _gelu_exact(h @ p["w_m1"].T + p["b_m1"] + t_emb)
    h = _gelu_exact(h @ p["w_m2"].T + p["b_m2"] + t_emb)
    return h @ p["w_out"].T + p["b_out"]


if __name__ == "__main__":
    key = jax.random.PRNGKey(0)
    k_p, k_x, k_t = jax.random.split(key, 3)

    input_dim, hidden_dim, output_dim = 2, 32, 2
    B = 16

    params = init_params(k_p, input_dim, hidden_dim, output_dim)
    x = jax.random.normal(k_x, (B, input_dim), jnp.float32)
    t = jax.random.uniform(k_t, (B, 1), jnp.float32)

    out = flow_model_2d(x, t, params)
    out = jax.block_until_ready(out)

    ref = flow_model_2d_ref(x, t, params)
    assert out.shape == (B, output_dim)
    assert jnp.allclose(out, ref, atol=2e-5, rtol=2e-5), "mismatch vs reference"

    print("KERNEL_OK")
</pallas_src>

<mosaic_0001>
module attributes {stable_mosaic.version = 11 : i64} {
  func.func @_flow_kernel(%arg0: i32, %arg1: memref<2x128xf32, #tpu.memory_space<vmem>>, %arg2: memref<1x128xf32, #tpu.memory_space<vmem>>, %arg3: memref<32x2xf32, #tpu.memory_space<vmem>>, %arg4: memref<32x1xf32, #tpu.memory_space<vmem>>, %arg5: memref<32x1xf32, #tpu.memory_space<vmem>>, %arg6: memref<32x32xf32, #tpu.memory_space<vmem>>, %arg7: memref<32x1xf32, #tpu.memory_space<vmem>>, %arg8: memref<32x32xf32, #tpu.memory_space<vmem>>, %arg9: memref<32x1xf32, #tpu.memory_space<vmem>>, %arg10: memref<2x32xf32, #tpu.memory_space<vmem>>, %arg11: memref<2x1xf32, #tpu.memory_space<vmem>>, %arg12: memref<2x128xf32, #tpu.memory_space<vmem>>) attributes {dimension_semantics = [#tpu.dimension_semantics<parallel>], iteration_bounds = array<i64: 1>, scalar_prefetch = 0 : i64, scratch_operands = 0 : i64, tpu.core_type = #tpu.core_type<tc>, window_params = [{transform_indices = @transform_0, window_bounds = array<i64: 2, 128>}, {transform_indices = @transform_1, window_bounds = array<i64: 1, 128>}, {pipeline_mode = #tpu.pipeline_mode<synchronous>, transform_indices = @transform_2, window_bounds = array<i64: 32, 2>}, {pipeline_mode = #tpu.pipeline_mode<synchronous>, transform_indices = @transform_3, window_bounds = array<i64: 32, 1>}, {pipeline_mode = #tpu.pipeline_mode<synchronous>, transform_indices = @transform_4, window_bounds = array<i64: 32, 1>}, {pipeline_mode = #tpu.pipeline_mode<synchronous>, transform_indices = @transform_5, window_bounds = array<i64: 32, 32>}, {pipeline_mode = #tpu.pipeline_mode<synchronous>, transform_indices = @transform_6, window_bounds = array<i64: 32, 1>}, {pipeline_mode = #tpu.pipeline_mode<synchronous>, transform_indices = @transform_7, window_bounds = array<i64: 32, 32>}, {pipeline_mode = #tpu.pipeline_mode<synchronous>, transform_indices = @transform_8, window_bounds = array<i64: 32, 1>}, {pipeline_mode = #tpu.pipeline_mode<synchronous>, transform_indices = @transform_9, window_bounds = array<i64: 2, 32>}, {pipeline_mode = #tpu.pipeline_mode<synchronous>, transform_indices = @transform_10, window_bounds = array<i64: 2, 1>}, {transform_indices = @transform_11, window_bounds = array<i64: 2, 128>}]} {
    %c0 = arith.constant 0 : index
    %c0_0 = arith.constant 0 : index
    %0 = vector.load %arg1[%c0, %c0_0] : memref<2x128xf32, #tpu.memory_space<vmem>>, vector<2x128xf32>
    %c0_1 = arith.constant 0 : index
    %c0_2 = arith.constant 0 : index
    %1 = vector.load %arg2[%c0_1, %c0_2] : memref<1x128xf32, #tpu.memory_space<vmem>>, vector<1x128xf32>
    %c0_3 = arith.constant 0 : index
    %c0_4 = arith.constant 0 : index
    %2 = vector.load %arg5[%c0_3, %c0_4] : memref<32x1xf32, #tpu.memory_space<vmem>>, vector<32x1xf32>
    %3 = vector.broadcast %2 : vector<32x1xf32> to vector<32x128xf32>
    %4 = vector.broadcast %1 : vector<1x128xf32> to vector<32x128xf32>
    %5 = arith.mulf %3, %4 : vector<32x128xf32>
    %c0_5 = arith.constant 0 : index
    %c0_6 = arith.constant 0 : index
    %6 = vector.load %arg3[%c0_5, %c0_6] : memref<32x2xf32, #tpu.memory_space<vmem>>, vector<32x2xf32>
    %cst = arith.constant dense<0.000000e+00> : vector<32x128xf32>
    %7 = tpu.matmul %6, %0, %cst {dimension_numbers = #tpu.dot_dimension_numbers<[1], [0], [0], [1], [0, 0, 1, 1], [], []>} : vector<32x2xf32>, vector<2x128xf32>, vector<32x128xf32> -> vector<32x128xf32>
    %8 = arith.addf %7, %5 : vector<32x128xf32>
    %c0_7 = arith.constant 0 : index
    %c0_8 = arith.constant 0 : index
    %9 = vector.load %arg4[%c0_7, %c0_8] : memref<32x1xf32, #tpu.memory_space<vmem>>, vector<32x1xf32>
    %10 = vector.broadcast %9 : vector<32x1xf32> to vector<32x128xf32>
    %11 = arith.addf %8, %10 : vector<32x128xf32>
    %cst_9 = arith.constant 5.000000e-01 : f32
    %12 = vector.broadcast %cst_9 : f32 to vector<32x128xf32>
    %13 = arith.mulf %12, %11 : vector<32x128xf32>
    %cst_10 = arith.constant 0.707106769 : f32
    %14 = vector.broadcast %cst_10 : f32 to vector<32x128xf32>
    %15 = arith.mulf %11, %14 : vector<32x128xf32>
    %16 = math.erf %15 : vector<32x128xf32>
    %cst_11 = arith.constant 1.000000e+00 : f32
    %17 = vector.broadcast %cst_11 : f32 to vector<32x128xf32>
    %18 = arith.addf %17, %16 : vector<32x128xf32>
    %19 = arith.mulf %13, %18 : vector<32x128xf32>
    %c0_12 = arith.constant 0 : index
    %c0_13 = arith.constant 0 : index
    %20 = vector.load %arg6[%c0_12, %c0_13] : memref<32x32xf32, #tpu.memory_space<vmem>>, vector<32x32xf32>
    %cst_14 = arith.constant dense<0.000000e+00> : vector<32x128xf32>
    %21 = tpu.matmul %20, %19, %cst_14 {dimension_numbers = #tpu.dot_dimension_numbers<[1], [0], [0], [1], [0, 0, 1, 1], [], []>} : vector<32x32xf32>, vector<32x128xf32>, vector<32x128xf32> -> vector<32x128xf32>
    %22 = arith.addf %21, %5 : vector<32x128xf32>
    %c0_15 = arith.constant 0 : index
    %c0_16 = arith.constant 0 : index
    %23 = vector.load %arg7[%c0_15, %c0_16] : memref<32x1xf32, #tpu.memory_space<vmem>>, vector<32x1xf32>
    %24 = vector.broadcast %23 : vector<32x1xf32> to vector<32x128xf32>
    %25 = arith.addf %22, %24 : vector<32x128xf32>
    %cst_17 = arith.constant 5.000000e-01 : f32
    %26 = vector.broadcast %cst_17 : f32 to vector<32x128xf32>
    %27 = arith.mulf %26, %25 : vector<32x128xf32>
    %cst_18 = arith.constant 0.707106769 : f32
    %28 = vector.broadcast %cst_18 : f32 to vector<32x128xf32>
    %29 = arith.mulf %25, %28 : vector<32x128xf32>
    %30 = math.erf %29 : vector<32x128xf32>
    %cst_19 = arith.constant 1.000000e+00 : f32
    %31 = vector.broadcast %cst_19 : f32 to vector<32x128xf32>
    %32 = arith.addf %31, %30 : vector<32x128xf32>
    %33 = arith.mulf %27, %32 : vector<32x128xf32>
    %c0_20 = arith.constant 0 : index
    %c0_21 = arith.constant 0 : index
    %34 = vector.load %arg8[%c0_20, %c0_21] : memref<32x32xf32, #tpu.memory_space<vmem>>, vector<32x32xf32>
    %cst_22 = arith.constant dense<0.000000e+00> : vector<32x128xf32>
    %35 = tpu.matmul %34, %33, %cst_22 {dimension_numbers = #tpu.dot_dimension_numbers<[1], [0], [0], [1], [0, 0, 1, 1], [], []>} : vector<32x32xf32>, vector<32x128xf32>, vector<32x128xf32> -> vector<32x128xf32>
    %36 = arith.addf %35, %5 : vector<32x128xf32>
    %c0_23 = arith.constant 0 : index
    %c0_24 = arith.constant 0 : index
    %37 = vector.load %arg9[%c0_23, %c0_24] : memref<32x1xf32, #tpu.memory_space<vmem>>, vector<32x1xf32>
    %38 = vector.broadcast %37 : vector<32x1xf32> to vector<32x128xf32>
    %39 = arith.addf %36, %38 : vector<32x128xf32>
    %cst_25 = arith.constant 5.000000e-01 : f32
    %40 = vector.broadcast %cst_25 : f32 to vector<32x128xf32>
    %41 = arith.mulf %40, %39 : vector<32x128xf32>
    %cst_26 = arith.constant 0.707106769 : f32
    %42 = vector.broadcast %cst_26 : f32 to vector<32x128xf32>
    %43 = arith.mulf %39, %42 : vector<32x128xf32>
    %44 = math.erf %43 : vector<32x128xf32>
    %cst_27 = arith.constant 1.000000e+00 : f32
    %45 = vector.broadcast %cst_27 : f32 to vector<32x128xf32>
    %46 = arith.addf %45, %44 : vector<32x128xf32>
    %47 = arith.mulf %41, %46 : vector<32x128xf32>
    %c0_28 = arith.constant 0 : index
    %c0_29 = arith.constant 0 : index
    %48 = vector.load %arg10[%c0_28, %c0_29] : memref<2x32xf32, #tpu.memory_space<vmem>>, vector<2x32xf32>
    %cst_30 = arith.constant dense<0.000000e+00> : vector<2x128xf32>
    %49 = tpu.matmul %48, %47, %cst_30 {dimension_numbers = #tpu.dot_dimension_numbers<[1], [0], [0], [1], [0, 0, 1, 1], [], []>} : vector<2x32xf32>, vector<32x128xf32>, vector<2x128xf32> -> vector<2x128xf32>
    %c0_31 = arith.constant 0 : index
    %c0_32 = arith.constant 0 : index
    %50 = vector.load %arg11[%c0_31, %c0_32] : memref<2x1xf32, #tpu.memory_space<vmem>>, vector<2x1xf32>
    %51 = vector.broadcast %50 : vector<2x1xf32> to vector<2x128xf32>
    %52 = arith.addf %49, %51 : vector<2x128xf32>
    %c0_33 = arith.constant 0 : index
    %c0_34 = arith.constant 0 : index
    %53 = vector.load %arg12[%c0_33, %c0_34] : memref<2x128xf32, #tpu.memory_space<vmem>>, vector<2x128xf32>
    tpu.vector_store %arg12[%c0_33, %c0_34], %52 {strides = array<i32>} : memref<2x128xf32, #tpu.memory_space<vmem>>, vector<2x128xf32>,
    return
  }
  func.func @transform_0(%arg0: i32) -> (i32, i32) {
    %c0_i32 = arith.constant 0 : i32
    %c0_i32_0 = arith.constant 0 : i32
    return %c0_i32, %arg0 : i32, i32
  }
  func.func @transform_1(%arg0: i32) -> (i32, i32) {
    %c0_i32 = arith.constant 0 : i32
    %c0_i32_0 = arith.constant 0 : i32
    return %c0_i32, %arg0 : i32, i32
  }
  func.func @transform_2(%arg0: i32) -> (i32, i32) {
    %c0_i32 = arith.constant 0 : i32
    %c0_i32_0 = arith.constant 0 : i32
    %c0_i32_1 = arith.constant 0 : i32
    return %c0_i32, %c0_i32_0 : i32, i32
  }
  func.func @transform_3(%arg0: i32) -> (i32, i32) {
    %c0_i32 = arith.constant 0 : i32
    %c0_i32_0 = arith.constant 0 : i32
    %c0_i32_1 = arith.constant 0 : i32
    return %c0_i32, %c0_i32_0 : i32, i32
  }
  func.func @transform_4(%arg0: i32) -> (i32, i32) {
    %c0_i32 = arith.constant 0 : i32
    %c0_i32_0 = arith.constant 0 : i32
    %c0_i32_1 = arith.constant 0 : i32
    return %c0_i32, %c0_i32_0 : i32, i32
  }
  func.func @transform_5(%arg0: i32) -> (i32, i32) {
    %c0_i32 = arith.constant 0 : i32
    %c0_i32_0 = arith.constant 0 : i32
    %c0_i32_1 = arith.constant 0 : i32
    return %c0_i32, %c0_i32_0 : i32, i32
  }
  func.func @transform_6(%arg0: i32) -> (i32, i32) {
    %c0_i32 = arith.constant 0 : i32
    %c0_i32_0 = arith.constant 0 : i32
    %c0_i32_1 = arith.constant 0 : i32
    return %c0_i32, %c0_i32_0 : i32, i32
  }
  func.func @transform_7(%arg0: i32) -> (i32, i32) {
    %c0_i32 = arith.constant 0 : i32
    %c0_i32_0 = arith.constant 0 : i32
    %c0_i32_1 = arith.constant 0 : i32
    return %c0_i32, %c0_i32_0 : i32, i32
  }
  func.func @transform_8(%arg0: i32) -> (i32, i32) {
    %c0_i32 = arith.constant 0 : i32
    %c0_i32_0 = arith.constant 0 : i32
    %c0_i32_1 = arith.constant 0 : i32
    return %c0_i32, %c0_i32_0 : i32, i32
  }
  func.func @transform_9(%arg0: i32) -> (i32, i32) {
    %c0_i32 = arith.constant 0 : i32
    %c0_i32_0 = arith.constant 0 : i32
    %c0_i32_1 = arith.constant 0 : i32
    return %c0_i32, %c0_i32_0 : i32, i32
  }
  func.func @transform_10(%arg0: i32) -> (i32, i32) {
    %c0_i32 = arith.constant 0 : i32
    %c0_i32_0 = arith.constant 0 : i32
    %c0_i32_1 = arith.constant 0 : i32
    return %c0_i32, %c0_i32_0 : i32, i32
  }
  func.func @transform_11(%arg0: i32) -> (i32, i32) {
    %c0_i32 = arith.constant 0 : i32
    %c0_i32_0 = arith.constant 0 : i32
    return %c0_i32, %arg0 : i32, i32
  }
}

</mosaic_0001>

<bundles_post_ra>
// kernel: flow_model_2d.1
= control target key start
LH: loop header
LB: loop body
LE: loop exit
PB: predicated region body
PF: predicated region fallthrough
CT: control target
= control target key end

     0   :  { %vm88_vm0 = vcmask 1041408   ;;  %v922_v0 = vmov 0   ;;  %vm75_vm1 = vcmask 15360   ;;  %s1484_s4 = inlined_call_operand.vmem [shape: f32[32,1], index: 4, kind: input, shape index: {}]   ;;  %s1485_s0 = inlined_call_operand.vmem [shape: f32[2,128], index: 0, kind: input, shape index: {}]   ;;  %s1486_s2 = inlined_call_operand.vmem [shape: f32[32,2], index: 2, kind: input, shape index: {}]   ;;  %s1487_s3 = inlined_call_operand.vmem [shape: f32[32,1], index: 3, kind: input, shape index: {}]   ;;  %s1488_s1 = inlined_call_operand.vmem [shape: f32[1,128], index: 1, kind: input, shape index: {}]   ;;  %s1489_s6 = inlined_call_operand.vmem [shape: f32[32,1], index: 6, kind: input, shape index: {}]   ;;  %s1490_s8 = inlined_call_operand.vmem [shape: f32[32,1], index: 8, kind: input, shape index: {}]   ;;  %s1491_s10 = inlined_call_operand.vmem [shape: f32[2,1], index: 10, kind: input, shape index: {}]   ;;  %s1492_s5 = inlined_call_operand.vmem [shape: f32[32,32], index: 5, kind: input, shape index: {}]   ;;  %s1493_s7 = inlined_call_operand.vmem [shape: f32[32,32], index: 7, kind: input, shape index: {}]   ;;  %s1494_s9 = inlined_call_operand.vmem [shape: f32[2,32], index: 9, kind: input, shape index: {}]   ;;  %s1495_s11 = inlined_call_operand.vmem [shape: f32[2,128], index: 11, kind: output, shape index: {}]  }
   0x1   :  { %895 = vset.pattern.permute.xlu1 %v922_v0  ;;  %894 = vset.pattern.permute.xlu0 %v922_v0  ;;  %v43_v1 = vld [vmem:[%s1484_s4 + $0x18] sm:$0xff]  ;;  %v41_v2 = vld [vmem:[%s1484_s4 + $0x8] sm:$0xff]  ;;  %v38_v3 = vld [vmem:[%s1485_s0] sm:$0x3] }
   0x2   :  { %61 = vperm.xlu0 %894, %v43_v1   ;;  %51 = vperm.xlu1 %895, %v41_v2   ;;  %v71_v4 = vld [vmem:[%s1486_s2] sm:$0xff]  ;;  %v42_v6 = vld [vmem:[%s1484_s4 + $0x10] sm:$0xff]  ;;  %v124_v7 = vld [vmem:[%s1487_s3 + $0x18] sm:$0xff] }
   0x3   :  { %859 = vmatpush.msk.msra.mxu0 %vm88_vm0, %v38_v3  ;;  %896 = vset.pattern.permute.xlu2 %v922_v0  ;;  %v40_v5 = vld [vmem:[%s1484_s4] sm:$0xff]  ;;  %v72_v8 = vld [vmem:[%s1486_s2 + $0x8] sm:$0xff]  ;;  %v123_v9 = vld [vmem:[%s1487_s3 + $0x10] sm:$0xff] }
   0x4   :  { %860 = vmatmul.msk.f32.vlgmr.msra.gmra.mxu0 %vm75_vm1, %v71_v4  ;;  %46 = vperm.xlu2 %896, %v40_v5   ;;  %v122_v10 = vld [vmem:[%s1487_s3 + $0x8] sm:$0xff]  ;;  %v121_v11 = vld [vmem:[%s1487_s3] sm:$0xff]  ;;  %v73_v12 = vld [vmem:[%s1486_s2 + $0x10] sm:$0xff] }
   0x5   :  { %v374_v13 = vld [vmem:[%s1489_s6 + $0x18] sm:$0xff]  ;;  %v373_v14 = vld [vmem:[%s1489_s6 + $0x10] sm:$0xff]  ;;  %v372_v15 = vld [vmem:[%s1489_s6 + $0x8] sm:$0xff] }
   0x6   :  { %v74_v16 = vld [vmem:[%s1486_s2 + $0x18] sm:$0xff]  ;;  %v371_v17 = vld [vmem:[%s1489_s6] sm:$0xff]  ;;  %v622_v19 = vld [vmem:[%s1490_s8 + $0x10] sm:$0xff] }
   0x7   :  { %v623_v18 = vld [vmem:[%s1490_s8 + $0x18] sm:$0xff]  ;;  %v621_v20 = vld [vmem:[%s1490_s8 + $0x8] sm:$0xff]  ;;  %v620_v21 = vld [vmem:[%s1490_s8] sm:$0xff] }
   0x8   :  { %v825_v22 = vld [vmem:[%s1491_s10] sm:$0x3] }
   0x9   :  { %v897_v25 = vld [vmem:[%s1488_s1] ss:$0 sm:$0xff] }
   0xa   :  { %56 = vperm.xlu0 %894, %v42_v6   ;;  %142 = vperm.xlu1 %895, %v124_v7  }
   0xc   :  { %861 = vmatmul.msk.f32.gmra.mxu0 %vm75_vm1, %v72_v8  ;;  %137 = vperm.xlu2 %896, %v123_v9  }
  0x12   :  { %132 = vperm.xlu0 %894, %v122_v10   ;;  %127 = vperm.xlu1 %895, %v121_v11  }
  0x14   :  { %862 = vmatmul.msk.f32.gmra.mxu0 %vm75_vm1, %v73_v12  ;;  %392 = vperm.xlu2 %896, %v374_v13  }
  0x1a   :  { %387 = vperm.xlu0 %894, %v373_v14   ;;  %382 = vperm.xlu1 %895, %v372_v15  }
  0x1c   :  { %863 = vmatmul.msk.f32.gmra.mxu0 %vm75_vm1, %v74_v16  ;;  %377 = vperm.xlu2 %896, %v371_v17  }
  0x22   :  { %641 = vperm.xlu0 %894, %v623_v18   ;;  %636 = vperm.xlu1 %895, %v622_v19  }
  0x24   :  { %631 = vperm.xlu2 %896, %v621_v20  }
  0x2a   :  { %626 = vperm.xlu0 %894, %v620_v21   ;;  %828 = vperm.xlu1 %895, %v825_v22  }
  0x5e   :  { %v47_v27 = vpop.permute.xlu2 %46 }
  0x5f   :  { %v1056_v28 = vmul.f32 %v897_v25, %v47_v27 }
  0x66   :  { %v138_v51 = vpop.permute.xlu2 %137 }
  0x74   :  { %v52_v23 = vpop.permute.xlu1 %51  ;;  %v62_v24 = vpop.permute.xlu0 %61 }
  0x75   :  { %v1061_v34 = vmul.f32 %v897_v25, %v52_v23  ;;  %v1093_v60 = vmul.f32 %v897_v25, %v62_v24 }
  0x7c   :  { %v143_v26 = vpop.permute.xlu1 %142  ;;  %v57_v29 = vpop.permute.xlu0 %56 }
  0x7d   :  { %v1074_v43 = vmul.f32 %v897_v25, %v57_v29 }
  0x81   :  { %v109_v30 = vpop.f32.mrf.mxu0 }
  0x82   :  { %v110_v31 = vadd.f32 %v109_v30, %v1056_v28 }
  0x84   :  { %v128_v32 = vpop.permute.xlu1 %127  ;;  %v133_v39 = vpop.permute.xlu0 %132 }
  0x85   :  { %v1059_v33 = vadd.f32 %v128_v32, %v110_v31 }
  0x87   :  { %v1064_v35 = vmul.f32 0.70710677, %v1059_v33 }
  0x89   :  { %v157_v36 = vmul.f32 %v1064_v35, %v1064_v35  ;;  %v112_v37 = vpop.f32.mrf.mxu0 }
  0x8a   :  { %v113_v38 = vadd.f32 %v112_v37, %v1061_v34 }
  0x8b   :  { %v1069_v40 = vmin.f32 %v157_v36, 16.0 }
  0x8c   :  { %v1071_v41 = vadd.f32 %v133_v39, %v113_v38 }
  0x8d   :  { %v170_v42 = vmul.f32 3.8918573e-05, %v1069_v40  ;;  %v159_v55 = vmul.f32 2.1237322e-06, %v1069_v40 }
  0x8e   :  { %v1077_v44 = vmul.f32 0.70710677, %v1071_v41 }
  0x8f   :  { %v171_v45 = vadd.f32 0.001143296, %v170_v42  ;;  %v160_v62 = vadd.f32 0.00028619796, %v159_v55 }
  0x90   :  { %v197_v46 = vmul.f32 %v1077_v44, %v1077_v44 }
  0x91   :  { %v115_v47 = vpop.f32.mrf.mxu0  ;;  %v172_v48 = vmul.f32 %v171_v45, %v1069_v40  ;;  %v161_v9 = vmul.f32 %v160_v62, %v1069_v40 }
  0x92   :  { %v1082_v49 = vmin.f32 %v197_v46, 16.0  ;;  %v116_v50 = vadd.f32 %v115_v47, %v1074_v43 }
  0x93   :  { %v173_v52 = vadd.f32 0.014752088, %v172_v48  ;;  %v162_v18 = vadd.f32 0.0036580483, %v161_v9 }
  0x94   :  { %v1085_v53 = vadd.f32 %v138_v51, %v116_v50  ;;  %v210_v54 = vmul.f32 3.8918573e-05, %v1082_v49  ;;  %v199_v4 = vmul.f32 2.1237322e-06, %v1082_v49 }
  0x95   :  { %v174_v56 = vmul.f32 %v173_v52, %v1069_v40  ;;  %v163_v30 = vmul.f32 %v162_v18, %v1069_v40 }
  0x96   :  { %v1091_v57 = vmul.f32 0.70710677, %v1085_v53  ;;  %v211_v58 = vadd.f32 0.001143296, %v210_v54  ;;  %v200_v15 = vadd.f32 0.00028619796, %v199_v4 }
  0x97   :  { %v175_v59 = vadd.f32 0.112945676, %v174_v56  ;;  %v164_v50 = vadd.f32 0.05243302, %v163_v30 }
  0x98   :  { %v237_v61 = vmul.f32 %v1091_v57, %v1091_v57  ;;  %v212_v0 = vmul.f32 %v211_v58, %v1082_v49  ;;  %v201_v25 = vmul.f32 %v200_v15, %v1082_v49 }
  0x99   :  { %v118_v63 = vpop.f32.mrf.mxu0  ;;  %v176_v1 = vmul.f32 %v175_v59, %v1069_v40 }
  0x9a   :  { %v1099_v2 = vmin.f32 %v237_v61, 16.0  ;;  %v119_v3 = vadd.f32 %v118_v63, %v1093_v60  ;;  %v213_v5 = vadd.f32 0.014752088, %v212_v0  ;;  %v202_v45 = vadd.f32 0.0036580483, %v201_v25 }
  0x9b   :  { %v177_v11 = vadd.f32 0.4994258, %v176_v1  ;;  %v165_v61 = vmul.f32 %v164_v50, %v1069_v40 }
  0x9c   :  { %v1103_v6 = vadd.f32 %v143_v26, %v119_v3  ;;  %v239_v7 = vmul.f32 2.1237322e-06, %v1099_v2  ;;  %v250_v8 = vmul.f32 3.8918573e-05, %v1099_v2  ;;  %v214_v10 = vmul.f32 %v213_v5, %v1082_v49 }
  0x9d   :  { %v178_v20 = vmul.f32 %v177_v11, %v1069_v40  ;;  %v203_v58 = vmul.f32 %v202_v45, %v1082_v49  ;;  %v166_v9 = vadd.f32 0.18741608, %v165_v61 }
  0x9e   :  { %v1110_v12 = vmul.f32 0.70710677, %v1103_v6  ;;  %v240_v13 = vadd.f32 0.00028619796, %v239_v7  ;;  %v251_v14 = vadd.f32 0.001143296, %v250_v8 }
  0x9f   :  { %v215_v17 = vadd.f32 0.112945676, %v214_v10  ;;  %v1125_v32 = vadd.f32 1.0, %v178_v20  ;;  %v204_v5 = vadd.f32 0.05243302, %v203_v58  ;;  %v167_v18 = vmul.f32 %v166_v9, %v1069_v40 }
  0xa0   :  { %v277_v16 = vmul.f32 %v1110_v12, %v1110_v12  ;;  %v252_v19 = vmul.f32 %v251_v14, %v1099_v2  ;;  %v241_v22 = vmul.f32 %v240_v13, %v1099_v2 }
  0xa1   :  { %v216_v23 = vmul.f32 %v215_v17, %v1082_v49  ;;  %898 = vrcp.f32 %v1125_v32  ;;  %vm185_vm2 = vweird.f32 %v1125_v32  ;;  %v189_v40 = vand.u32 2147483647, %v1125_v32 }
  0xa2   :  { %v1116_v21 = vmin.f32 %v277_v16, 16.0  ;;  %v253_v24 = vadd.f32 0.014752088, %v252_v19  ;;  %v242_v38 = vadd.f32 0.0036580483, %v241_v22  ;;  %v205_v16 = vmul.f32 %v204_v5, %v1082_v49 }
  0xa3   :  { %v217_v29 = vadd.f32 0.4994258, %v216_v23  ;;  %vm190_vm14 = vcmp.eq.f32.partialorder %v189_v40, 8.507059e+37 }
  0xa4   :  { %v279_v26 = vmul.f32 2.1237322e-06, %v1116_v21  ;;  %v290_v27 = vmul.f32 3.8918573e-05, %v1116_v21  ;;  %v254_v31 = vmul.f32 %v253_v24, %v1099_v2  ;;  %v243_v54 = vmul.f32 %v242_v38, %v1099_v2 }
  0xa5   :  { %v218_v39 = vmul.f32 %v217_v29, %v1082_v49 }
  0xa6   :  { %v280_v36 = vadd.f32 0.00028619796, %v279_v26  ;;  %v291_v37 = vadd.f32 0.001143296, %v290_v27  ;;  %v255_v42 = vadd.f32 0.112945676, %v254_v31 }
  0xa7   :  { %v1130_v48 = vadd.f32 1.0, %v218_v39  ;;  %v244_v0 = vadd.f32 0.05243302, %v243_v54  ;;  %v1140_v1 = vpop.eup %898  ;;  %v206_v26 = vadd.f32 0.18741608, %v205_v16 }
  0xa8   :  { %v281_v46 = vmul.f32 %v280_v36, %v1116_v21  ;;  %v292_v47 = vmul.f32 %v291_v37, %v1116_v21  ;;  %v256_v51 = vmul.f32 %v255_v42, %v1099_v2  ;;  %v181_v14 = vmul.f32 %v1140_v1, %v1125_v32 }
  0xa9   :  { %900 = vrcp.f32 %v1130_v48  ;;  %v245_v11 = vmul.f32 %v244_v0, %v1099_v2  ;;  %v168_v27 = vadd.f32 1.1283791, %v167_v18  ;;  %v207_v39 = vmul.f32 %v206_v26, %v1082_v49 }
  0xaa   :  { %v293_v52 = vadd.f32 0.014752088, %v292_v47  ;;  %v282_v55 = vadd.f32 0.0036580483, %v281_v46  ;;  %v257_v56 = vadd.f32 0.4994258, %v256_v51  ;;  %vm225_vm5 = vweird.f32 %v1130_v48 }
  0xab   :  { %v246_v22 = vadd.f32 0.18741608, %v245_v11  ;;  %v182_v23 = vsub.f32 1.0, %v181_v14  ;;  %v191_v42 = vand.u32 2147483648, %v1125_v32  ;;  %v229_v46 = vand.u32 2147483647, %v1130_v48 }
  0xac   :  { %v294_v59 = vmul.f32 %v293_v52, %v1116_v21  ;;  %v258_v62 = vmul.f32 %v257_v56, %v1099_v2  ;;  %v283_v3 = vmul.f32 %v282_v55, %v1116_v21  ;;  %v231_v47 = vand.u32 2147483648, %v1130_v48 }
  0xad   :  { %v247_v31 = vmul.f32 %v246_v22, %v1099_v2  ;;  %v183_v36 = vmul.f32 %v1140_v1, %v182_v23  ;;  %vm186_vm6 = vweird.f32 %v1140_v1  ;;  %vm230_vm10 = vcmp.eq.f32.partialorder %v229_v46, 8.507059e+37  ;;  %v393_v46 = vpop.permute.xlu2 %392 }
  0xae   :  { %v295_v63 = vadd.f32 0.112945676, %v294_v59  ;;  %v259_v4 = vadd.f32 1.0, %v258_v62  ;;  %v284_v15 = vadd.f32 0.05243302, %v283_v3  ;;  %vm1187_vm12 = vmor %vm185_vm2, %vm186_vm6  ;;  %v192_v32 = vor.u32 1.1754944e-38, %v191_v42 }
  0xaf   :  { %v1143_v7 = vpop.eup %900  ;;  %v248_v54 = vadd.f32 1.1283791, %v247_v31  ;;  %v184_v49 = vadd.f32 %v1140_v1, %v183_v36  ;;  %v208_v62 = vadd.f32 1.1283791, %v207_v39  ;;  %v149_v39 = vmul.f32 0.5, %v1059_v33  ;;  %v326_v33 = vld [vmem:[%s1492_s5 + $0x8] sm:$0xff] }
  0xb0   :  { %v296_v8 = vmul.f32 %v295_v63, %v1116_v21  ;;  %902 = vrcp.f32 %v259_v4  ;;  %v221_v13 = vmul.f32 %v1143_v7, %v1130_v48  ;;  %v285_v25 = vmul.f32 %v284_v15, %v1116_v21 }
  0xb1   :  { %v271_v45 = vand.u32 2147483648, %v259_v4  ;;  %vm226_vm3 = vweird.f32 %v1143_v7  ;;  %v269_v50 = vand.u32 2147483647, %v259_v4  ;;  %vm265_vm7 = vweird.f32 %v259_v4 }
  0xb2   :  { %v297_v10 = vadd.f32 0.4994258, %v296_v8  ;;  %v222_v19 = vsub.f32 1.0, %v221_v13  ;;  %v286_v37 = vadd.f32 0.18741608, %v285_v25  ;;  %vm1176_vm8 = vmor %vm225_vm5, %vm226_vm3  ;;  %v232_v48 = vor.u32 1.1754944e-38, %v231_v47 }
  0xb3   :  { %v272_v61 = vor.u32 1.1754944e-38, %v271_v45  ;;  %vm270_vm11 = vcmp.eq.f32.partialorder %v269_v50, 8.507059e+37  ;;  %v249_v5 = vmul.f32 %v248_v54, %v1091_v57  ;;  %v188_v9 = vsel %vm1187_vm12, %v1140_v1, %v184_v49  ;;  %v325_v45 = vld [vmem:[%s1492_s5] sm:$0xff] }
  0xb4   :  { %v298_v17 = vmul.f32 %v297_v10, %v1116_v21  ;;  %v223_v30 = vmul.f32 %v1143_v7, %v222_v19  ;;  %v287_v55 = vmul.f32 %v286_v37, %v1116_v21  ;;  %v209_v16 = vmul.f32 %v208_v62, %v1077_v44  ;;  %v383_v62 = vpop.permute.xlu1 %382 }
  0xb5   :  { %v169_v57 = vmul.f32 %v168_v27, %v1064_v35  ;;  %v193_v18 = vsel %vm190_vm14, %v192_v32, %v188_v9  ;;  %v151_v27 = vmul.f32 0.5, %v1085_v53  ;;  %v150_v37 = vmul.f32 0.5, %v1071_v41  ;;  %v328_v53 = vld [vmem:[%s1492_s5 + $0x18] sm:$0xff]  ;;  %v327_v41 = vld [vmem:[%s1492_s5 + $0x10] sm:$0xff]  ;;  %v378_v50 = vpop.permute.xlu2 %377 }
  0xb6   :  { %v1154_v20 = vadd.f32 1.0, %v298_v17  ;;  %v903_v24 = vpop.eup %902  ;;  %v224_v51 = vadd.f32 %v1143_v7, %v223_v30  ;;  %v288_v10 = vadd.f32 1.1283791, %v287_v55  ;;  %vm329_vm2 = vcmask 261120  }
  0xb7   :  { %v261_v29 = vmul.f32 %v903_v24, %v259_v4  ;;  %vm266_vm4 = vweird.f32 %v903_v24  ;;  %v194_v26 = vmul.f32 %v193_v18, %v169_v57 }
  0xb8   :  { %904 = vrcp.f32 %v1154_v20  ;;  %vm267_vm9 = vmor %vm265_vm7, %vm266_vm4  ;;  %v228_v21 = vsel %vm1176_vm8, %v1143_v7, %v224_v51  ;;  %v311_v4 = vand.u32 2147483648, %v1154_v20  ;;  %v309_v7 = vand.u32 2147483647, %v1154_v20 }
  0xb9   :  { %v262_v38 = vsub.f32 1.0, %v261_v29  ;;  %v233_v13 = vsel %vm230_vm10, %v232_v48, %v228_v21  ;;  %vm305_vm15 = vweird.f32 %v1154_v20  ;;  %v289_v1 = vmul.f32 %v288_v10, %v1110_v12 }
  0xba   :  { %v312_v17 = vor.u32 1.1754944e-38, %v311_v4  ;;  %vm310_vm1 = vcmp.eq.f32.partialorder %v309_v7, 8.507059e+37  ;;  %v234_v22 = vmul.f32 %v233_v13, %v209_v16  ;;  %v864_v36 = vclamps-f32 %v194_v26, 1.0 }
  0xbb   :  { %v263_v2 = vmul.f32 %v903_v24, %v262_v38 }
  0xbc   :  { %v865_v30 = vclamps-f32 %v234_v22, 1.0  ;;  %v317_v38 = vadd.f32 1.0, %v864_v36 }
  0xbd   :  { %v264_v58 = vadd.f32 %v903_v24, %v263_v2 }
  0xbe   :  { %v905_v52 = vpop.eup %904  ;;  %v318_v40 = vadd.f32 1.0, %v865_v30 }
  0xbf   :  { %v301_v56 = vmul.f32 %v905_v52, %v1154_v20  ;;  %v268_v0 = vsel %vm267_vm9, %v903_v24, %v264_v58  ;;  %vm306_vm13 = vweird.f32 %v905_v52  ;;  %v152_v20 = vmul.f32 0.5, %v1103_v6 }
  0xc0   :  { %v273_v8 = vsel %vm270_vm11, %v272_v61, %v268_v0  ;;  %vm307_vm0 = vmor %vm305_vm15, %vm306_vm13  ;;  %v322_v42 = vmul.f32 %v318_v40, %v150_v37  ;;  %v321_v6 = vmul.f32 %v317_v38, %v149_v39 }
  0xc1   :  { %v302_v63 = vsub.f32 1.0, %v301_v56  ;;  %v274_v15 = vmul.f32 %v273_v8, %v249_v5 }
  0xc3   :  { %v303_v11 = vmul.f32 %v905_v52, %v302_v63  ;;  %v866_v25 = vclamps-f32 %v274_v15, 1.0  ;;  %v388_v15 = vpop.permute.xlu0 %387 }
  0xc5   :  { %v304_v14 = vadd.f32 %v905_v52, %v303_v11  ;;  %v319_v44 = vadd.f32 1.0, %v866_v25 }
  0xc7   :  { %v308_v19 = vsel %vm307_vm0, %v905_v52, %v304_v14  ;;  %v323_v12 = vmul.f32 %v319_v44, %v151_v27 }
  0xc8   :  { %v313_v23 = vsel %vm310_vm1, %v312_v17, %v308_v19 }
  0xc9   :  { %v314_v24 = vmul.f32 %v313_v23, %v289_v1 }
  0xcb   :  { %v867_v29 = vclamps-f32 %v314_v24, 1.0 }
  0xcd   :  { %v320_v31 = vadd.f32 1.0, %v867_v29 }
  0xcf   :  { %v324_v35 = vmul.f32 %v320_v31, %v152_v20 }
  0xd1   :  { %354 = vmatpush.msra.mxu1 %v324_v35  ;;  %885 = vmatpush.msra.mxu3 %v324_v35 }
  0xd3   :  { %355 = vmatpush.msra.mxu1 %v323_v12  ;;  %886 = vmatpush.msra.mxu3 %v323_v12 }
  0xd5   :  { %356 = vmatpush.msra.mxu1 %v322_v42  ;;  %887 = vmatpush.msra.mxu3 %v322_v42 }
  0xd7   :  { %357 = vmatpush.msra.mxu1 %v321_v6  ;;  %888 = vmatpush.msra.mxu3 %v321_v6 }
  0xd8   :  { %868 = vmatmul.msk.f32.vlgmr.msra.gmra.mxu1 %vm329_vm2, %v325_v45  ;;  %871 = vmatmul.msk.f32.vlgmr.msra.gmra.mxu3 %vm329_vm2, %v328_v53 }
  0xe0   :  { %869 = vmatmul.msk.f32.gmra.mxu1 %vm329_vm2, %v326_v33 }
  0xe8   :  { %870 = vmatmul.msk.f32.gmra.mxu1 %vm329_vm2, %v327_v41 }
 0x155   :  { %v359_v47 = vpop.f32.mrf.mxu1 }
 0x156   :  { %v360_v2 = vadd.f32 %v359_v47, %v1056_v28 }
 0x158   :  { %v1222_v51 = vadd.f32 %v378_v50, %v360_v2 }
 0x15a   :  { %v1225_v52 = vmul.f32 0.70710677, %v1222_v51 }
 0x15b   :  { %v368_v54 = vpop.f32.mrf.mxu3 }
 0x15c   :  { %v407_v49 = vmul.f32 %v1225_v52, %v1225_v52  ;;  %v369_v55 = vadd.f32 %v368_v54, %v1093_v60 }
 0x15d   :  { %v362_v56 = vpop.f32.mrf.mxu1 }
 0x15e   :  { %v1230_v58 = vmin.f32 %v407_v49, 16.0  ;;  %v1232_v59 = vadd.f32 %v393_v46, %v369_v55  ;;  %v363_v61 = vadd.f32 %v362_v56, %v1061_v34 }
 0x160   :  { %v1236_v48 = vmul.f32 0.70710677, %v1232_v59  ;;  %v1238_v63 = vadd.f32 %v383_v62, %v363_v61  ;;  %v420_v0 = vmul.f32 3.8918573e-05, %v1230_v58  ;;  %v409_v4 = vmul.f32 2.1237322e-06, %v1230_v58 }
 0x162   :  { %v527_v21 = vmul.f32 %v1236_v48, %v1236_v48  ;;  %v1244_v3 = vmul.f32 0.70710677, %v1238_v63  ;;  %v421_v5 = vadd.f32 0.001143296, %v420_v0  ;;  %v410_v16 = vadd.f32 0.00028619796, %v409_v4 }
 0x164   :  { %v1247_v8 = vmin.f32 %v527_v21, 16.0  ;;  %v447_v9 = vmul.f32 %v1244_v3, %v1244_v3  ;;  %v422_v11 = vmul.f32 %v421_v5, %v1230_v58  ;;  %v411_v20 = vmul.f32 %v410_v16, %v1230_v58 }
 0x165   :  { %v365_v10 = vpop.f32.mrf.mxu1 }
 0x166   :  { %v1252_v7 = vmin.f32 %v447_v9, 16.0  ;;  %v366_v13 = vadd.f32 %v365_v10, %v1074_v43  ;;  %v529_v32 = vmul.f32 2.1237322e-06, %v1247_v8  ;;  %v540_v14 = vmul.f32 3.8918573e-05, %v1247_v8 }
 0x167   :  { %v423_v57 = vadd.f32 0.014752088, %v422_v11  ;;  %v412_v33 = vadd.f32 0.0036580483, %v411_v20 }
 0x168   :  { %v1257_v17 = vadd.f32 %v388_v15, %v366_v13  ;;  %v530_v18 = vadd.f32 0.00028619796, %v529_v32  ;;  %v541_v1 = vadd.f32 0.001143296, %v540_v14  ;;  %v449_v19 = vmul.f32 2.1237322e-06, %v1252_v7 }
 0x169   :  { %v460_v22 = vmul.f32 3.8918573e-05, %v1252_v7  ;;  %v424_v23 = vmul.f32 %v423_v57, %v1230_v58  ;;  %v413_v0 = vmul.f32 %v412_v33, %v1230_v58 }
 0x16a   :  { %v1263_v24 = vmul.f32 0.70710677, %v1257_v17  ;;  %v531_v25 = vmul.f32 %v530_v18, %v1247_v8  ;;  %v542_v26 = vmul.f32 %v541_v1, %v1247_v8  ;;  %v450_v29 = vadd.f32 0.00028619796, %v449_v19 }
 0x16b   :  { %v461_v30 = vadd.f32 0.001143296, %v460_v22  ;;  %v425_v35 = vadd.f32 0.112945676, %v424_v23  ;;  %v414_v16 = vadd.f32 0.05243302, %v413_v0 }
 0x16c   :  { %v487_v31 = vmul.f32 %v1263_v24, %v1263_v24  ;;  %v532_v44 = vadd.f32 0.0036580483, %v531_v25  ;;  %v543_v36 = vadd.f32 0.014752088, %v542_v26  ;;  %v451_v27 = vmul.f32 %v450_v29, %v1252_v7 }
 0x16d   :  { %v462_v40 = vmul.f32 %v461_v30, %v1252_v7  ;;  %v426_v39 = vmul.f32 %v425_v35, %v1230_v58  ;;  %v415_v29 = vmul.f32 %v414_v16, %v1230_v58 }
 0x16e   :  { %v1272_v12 = vmin.f32 %v487_v31, 16.0  ;;  %v533_v37 = vmul.f32 %v532_v44, %v1247_v8  ;;  %v544_v38 = vmul.f32 %v543_v36, %v1247_v8  ;;  %v452_v42 = vadd.f32 0.0036580483, %v451_v27 }
 0x16f   :  { %v463_v6 = vadd.f32 0.014752088, %v462_v40  ;;  %v427_v49 = vadd.f32 0.4994258, %v426_v39  ;;  %v416_v27 = vadd.f32 0.18741608, %v415_v29 }
 0x170   :  { %v545_v45 = vadd.f32 0.112945676, %v544_v38  ;;  %v489_v53 = vmul.f32 2.1237322e-06, %v1272_v12  ;;  %v534_v41 = vadd.f32 0.05243302, %v533_v37  ;;  %v453_v54 = vmul.f32 %v452_v42, %v1252_v7 }
 0x171   :  { %v500_v46 = vmul.f32 3.8918573e-05, %v1272_v12  ;;  %v464_v47 = vmul.f32 %v463_v6, %v1252_v7  ;;  %v428_v9 = vmul.f32 %v427_v49, %v1230_v58 }
 0x172   :  { %v546_v2 = vmul.f32 %v545_v45, %v1247_v8  ;;  %v490_v50 = vadd.f32 0.00028619796, %v489_v53  ;;  %v535_v21 = vmul.f32 %v534_v41, %v1247_v8  ;;  %v454_v11 = vadd.f32 0.05243302, %v453_v54 }
 0x173   :  { %v501_v55 = vadd.f32 0.001143296, %v500_v46  ;;  %v465_v56 = vadd.f32 0.112945676, %v464_v47  ;;  %v1289_v57 = vadd.f32 1.0, %v428_v9 }
 0x174   :  { %v547_v61 = vadd.f32 0.4994258, %v546_v2  ;;  %v491_v62 = vmul.f32 %v490_v50, %v1272_v12  ;;  %v536_v18 = vadd.f32 0.18741608, %v535_v21  ;;  %v455_v22 = vmul.f32 %v454_v11, %v1252_v7 }
 0x175   :  { %v502_v4 = vmul.f32 %v501_v55, %v1272_v12  ;;  %v466_v5 = vmul.f32 %v465_v56, %v1252_v7  ;;  %v417_v2 = vmul.f32 %v416_v27, %v1230_v58  ;;  %v439_v9 = vand.u32 2147483647, %v1289_v57 }
 0x176   :  { %v548_v10 = vmul.f32 %v547_v61, %v1247_v8  ;;  %v492_v15 = vadd.f32 0.0036580483, %v491_v62  ;;  %v537_v30 = vmul.f32 %v536_v18, %v1247_v8  ;;  %v456_v31 = vadd.f32 0.18741608, %v455_v22 }
 0x177   :  { %v503_v13 = vadd.f32 0.014752088, %v502_v4  ;;  %v467_v32 = vadd.f32 0.4994258, %v466_v5  ;;  %v441_v18 = vand.u32 2147483648, %v1289_v57  ;;  %vm435_vm11 = vweird.f32 %v1289_v57 }
 0x178   :  { %v549_v14 = vadd.f32 1.0, %v548_v10  ;;  %v493_v26 = vmul.f32 %v492_v15, %v1272_v12  ;;  %v538_v40 = vadd.f32 1.1283791, %v537_v30  ;;  %v457_v6 = vmul.f32 %v456_v31, %v1252_v7 }
 0x179   :  { %v504_v1 = vmul.f32 %v503_v13, %v1272_v12  ;;  %v468_v19 = vmul.f32 %v467_v32, %v1252_v7  ;;  %vm440_vm14 = vcmp.eq.f32.partialorder %v439_v9, 8.507059e+37 }
 0x17a   :  { %906 = vrcp.f32 %v549_v14  ;;  %v494_v35 = vadd.f32 0.05243302, %v493_v26  ;;  %v559_v42 = vand.u32 2147483647, %v549_v14  ;;  %v561_v53 = vand.u32 2147483648, %v549_v14 }
 0x17b   :  { %v505_v23 = vadd.f32 0.112945676, %v504_v1  ;;  %v1294_v25 = vadd.f32 1.0, %v468_v19  ;;  %908 = vrcp.f32 %v1289_v57  ;;  %v539_v50 = vmul.f32 %v538_v40, %v1236_v48 }
 0x17c   :  { %v495_v46 = vmul.f32 %v494_v35, %v1272_v12  ;;  %vm555_vm4 = vweird.f32 %v549_v14  ;;  %vm1315_vm5 = vcmp.eq.f32.partialorder %v559_v42, 8.507059e+37  ;;  %v562_v61 = vor.u32 1.1754944e-38, %v561_v53 }
 0x17d   :  { %v506_v20 = vmul.f32 %v505_v23, %v1272_v12  ;;  %910 = vrcp.f32 %v1294_v25  ;;  %v458_v62 = vadd.f32 1.1283791, %v457_v6  ;;  %vm475_vm6 = vweird.f32 %v1294_v25 }
 0x17e   :  { %v496_v58 = vadd.f32 0.18741608, %v495_v46  ;;  %v479_v4 = vand.u32 2147483647, %v1294_v25  ;;  %v481_v5 = vand.u32 2147483648, %v1294_v25 }
 0x17f   :  { %v507_v44 = vadd.f32 0.4994258, %v506_v20 }
 0x180   :  { %v907_v36 = vpop.eup %906  ;;  %v497_v1 = vmul.f32 %v496_v58, %v1272_v12  ;;  %v482_v26 = vor.u32 1.1754944e-38, %v481_v5  ;;  %vm480_vm13 = vcmp.eq.f32.partialorder %v479_v4, 8.507059e+37 }
 0x181   :  { %v551_v37 = vmul.f32 %v907_v36, %v549_v14  ;;  %v508_v38 = vmul.f32 %v507_v44, %v1272_v12  ;;  %v1303_v39 = vpop.eup %908  ;;  %vm556_vm3 = vweird.f32 %v907_v36  ;;  %v402_v14 = vmul.f32 0.5, %v1232_v59 }
 0x182   :  { %v431_v41 = vmul.f32 %v1303_v39, %v1289_v57  ;;  %vm557_vm7 = vmor %vm555_vm4, %vm556_vm3  ;;  %vm436_vm9 = vweird.f32 %v1303_v39  ;;  %v459_v59 = vmul.f32 %v458_v62, %v1244_v3  ;;  %v442_v44 = vor.u32 1.1754944e-38, %v441_v18 }
 0x183   :  { %v911_v45 = vpop.eup %910  ;;  %v552_v8 = vsub.f32 1.0, %v551_v37  ;;  %v1306_v33 = vadd.f32 1.0, %v508_v38  ;;  %vm437_vm12 = vmor %vm435_vm11, %vm436_vm9 }
 0x184   :  { %v471_v47 = vmul.f32 %v911_v45, %v1294_v25  ;;  %v432_v55 = vsub.f32 1.0, %v431_v41  ;;  %vm476_vm8 = vweird.f32 %v911_v45  ;;  %v418_v25 = vadd.f32 1.1283791, %v417_v2 }
 0x185   :  { %v553_v54 = vmul.f32 %v907_v36, %v552_v8  ;;  %912 = vrcp.f32 %v1306_v33  ;;  %vm1331_vm10 = vmor %vm475_vm6, %vm476_vm8  ;;  %v521_v12 = vand.u32 2147483648, %v1306_v33  ;;  %v519_v57 = vand.u32 2147483647, %v1306_v33 }
 0x186   :  { %v472_v49 = vsub.f32 1.0, %v471_v47  ;;  %v433_v48 = vmul.f32 %v1303_v39, %v432_v55  ;;  %vm515_vm0 = vweird.f32 %v1306_v33  ;;  %v419_v38 = vmul.f32 %v418_v25, %v1225_v52 }
 0x187   :  { %v554_v56 = vadd.f32 %v907_v36, %v553_v54  ;;  %vm520_vm3 = vcmp.eq.f32.partialorder %v519_v57, 8.507059e+37  ;;  %v401_v2 = vmul.f32 0.5, %v1257_v17  ;;  %v400_v52 = vmul.f32 0.5, %v1238_v63  ;;  %v578_v17 = vld [vmem:[%s1493_s7 + $0x18] sm:$0xff]  ;;  %v577_v63 = vld [vmem:[%s1493_s7 + $0x10] sm:$0xff] }
 0x188   :  { %v473_v0 = vmul.f32 %v911_v45, %v472_v49  ;;  %v434_v13 = vadd.f32 %v1303_v39, %v433_v48 }
 0x189   :  { %v558_v21 = vsel %vm557_vm7, %v907_v36, %v554_v56  ;;  %v498_v36 = vadd.f32 1.1283791, %v497_v1  ;;  %v575_v56 = vld [vmem:[%s1493_s7] sm:$0xff] }
 0x18a   :  { %v563_v10 = vsel %vm1315_vm5, %v562_v61, %v558_v21  ;;  %v474_v11 = vadd.f32 %v911_v45, %v473_v0  ;;  %v438_v30 = vsel %vm437_vm12, %v1303_v39, %v434_v13  ;;  %v522_v39 = vor.u32 1.1754944e-38, %v521_v12  ;;  %v642_v61 = vpop.permute.xlu0 %641 }
 0x18b   :  { %v913_v32 = vpop.eup %912  ;;  %v564_v15 = vmul.f32 %v563_v10, %v539_v50  ;;  %v443_v3 = vsel %vm440_vm14, %v442_v44, %v438_v30  ;;  %v499_v42 = vmul.f32 %v498_v36, %v1263_v24  ;;  %v399_v24 = vmul.f32 0.5, %v1222_v51  ;;  %v576_v51 = vld [vmem:[%s1493_s7 + $0x8] sm:$0xff]  ;;  %v637_v36 = vpop.permute.xlu1 %636 }
 0x18c   :  { %v511_v19 = vmul.f32 %v913_v32, %v1306_v33  ;;  %v478_v22 = vsel %vm1331_vm10, %v911_v45, %v474_v11  ;;  %vm516_vm15 = vweird.f32 %v913_v32  ;;  %v444_v45 = vmul.f32 %v443_v3, %v419_v38 }
 0x18d   :  { %v875_v23 = vclamps-f32 %v564_v15, 1.0  ;;  %v483_v31 = vsel %vm480_vm13, %v482_v26, %v478_v22  ;;  %vm517_vm1 = vmor %vm515_vm0, %vm516_vm15  ;;  %v632_v15 = vpop.permute.xlu2 %631 }
 0x18e   :  { %v512_v29 = vsub.f32 1.0, %v511_v19  ;;  %v484_v37 = vmul.f32 %v483_v31, %v459_v59  ;;  %v872_v47 = vclamps-f32 %v444_v45, 1.0 }
 0x18f   :  { %v570_v20 = vadd.f32 1.0, %v875_v23 }
 0x190   :  { %v513_v35 = vmul.f32 %v913_v32, %v512_v29  ;;  %v873_v41 = vclamps-f32 %v484_v37, 1.0  ;;  %v567_v7 = vadd.f32 1.0, %v872_v47 }
 0x191   :  { %v574_v27 = vmul.f32 %v570_v20, %v402_v14 }
 0x192   :  { %v514_v40 = vadd.f32 %v913_v32, %v513_v35  ;;  %v568_v50 = vadd.f32 1.0, %v873_v41  ;;  %v571_v55 = vmul.f32 %v567_v7, %v399_v24  ;;  %v627_v21 = vpop.permute.xlu0 %626 }
 0x193   :  { %603 = vmatpush.msra.mxu2 %v574_v27  ;;  %889 = vmatpush.msrb.mxu3 %v574_v27 }
 0x194   :  { %v518_v6 = vsel %vm517_vm1, %v913_v32, %v514_v40  ;;  %v572_v49 = vmul.f32 %v568_v50, %v400_v52 }
 0x195   :  { %v523_v8 = vsel %vm520_vm3, %v522_v39, %v518_v6 }
 0x196   :  { %v524_v53 = vmul.f32 %v523_v8, %v499_v42 }
 0x198   :  { %v874_v46 = vclamps-f32 %v524_v53, 1.0 }
 0x19a   :  { %v569_v33 = vadd.f32 1.0, %v874_v46 }
 0x19c   :  { %v573_v54 = vmul.f32 %v569_v33, %v401_v2 }
 0x19e   :  { %604 = vmatpush.msra.mxu2 %v573_v54  ;;  %890 = vmatpush.msrb.mxu3 %v573_v54 }
 0x1a0   :  { %605 = vmatpush.msra.mxu2 %v572_v49  ;;  %891 = vmatpush.msrb.mxu3 %v572_v49 }
 0x1a2   :  { %606 = vmatpush.msra.mxu2 %v571_v55  ;;  %892 = vmatpush.msrb.mxu3 %v571_v55 }
 0x1a3   :  { %876 = vmatmul.msk.f32.vlgmr.msra.gmra.mxu2 %vm329_vm2, %v575_v56  ;;  %879 = vmatmul.msk.f32.vlgmr.msrb.gmra.mxu3 %vm329_vm2, %v578_v17 }
 0x1ab   :  { %877 = vmatmul.msk.f32.gmra.mxu2 %vm329_vm2, %v576_v51 }
 0x1b3   :  { %878 = vmatmul.msk.f32.gmra.mxu2 %vm329_vm2, %v577_v63 }
 0x226   :  { %v608_v62 = vpop.f32.mrf.mxu2  ;;  %v617_v58 = vpop.f32.mrf.mxu3 }
 0x227   :  { %v609_v0 = vadd.f32 %v608_v62, %v1056_v28  ;;  %v618_v48 = vadd.f32 %v617_v58, %v1093_v60 }
 0x229   :  { %v1369_v4 = vadd.f32 %v627_v21, %v609_v0  ;;  %v1371_v5 = vadd.f32 %v642_v61, %v618_v48 }
 0x22b   :  { %v1374_v9 = vmul.f32 0.70710677, %v1369_v4  ;;  %v1377_v10 = vmul.f32 0.70710677, %v1371_v5 }
 0x22d   :  { %v656_v11 = vmul.f32 %v1374_v9, %v1374_v9  ;;  %v776_v13 = vmul.f32 %v1377_v10, %v1377_v10 }
 0x22e   :  { %v611_v28 = vpop.f32.mrf.mxu2 }
 0x22f   :  { %v1383_v32 = vmin.f32 %v656_v11, 16.0  ;;  %v1385_v60 = vmin.f32 %v776_v13, 16.0  ;;  %v612_v14 = vadd.f32 %v611_v28, %v1061_v34 }
 0x231   :  { %v778_v16 = vmul.f32 2.1237322e-06, %v1385_v60  ;;  %v789_v18 = vmul.f32 3.8918573e-05, %v1385_v60  ;;  %v1390_v1 = vadd.f32 %v632_v15, %v612_v14  ;;  %v669_v19 = vmul.f32 3.8918573e-05, %v1383_v32 }
 0x232   :  { %v658_v40 = vmul.f32 2.1237322e-06, %v1383_v32 }
 0x233   :  { %v779_v22 = vadd.f32 0.00028619796, %v778_v16  ;;  %v790_v23 = vadd.f32 0.001143296, %v789_v18  ;;  %v1394_v59 = vmul.f32 0.70710677, %v1390_v1 }
 0x234   :  { %v670_v26 = vadd.f32 0.001143296, %v669_v19  ;;  %v659_v41 = vadd.f32 0.00028619796, %v658_v40 }
 0x235   :  { %v780_v25 = vmul.f32 %v779_v22, %v1385_v60  ;;  %v791_v29 = vmul.f32 %v790_v23, %v1385_v60  ;;  %v696_v34 = vmul.f32 %v1394_v59, %v1394_v59 }
 0x236   :  { %v614_v30 = vpop.f32.mrf.mxu2  ;;  %v671_v20 = vmul.f32 %v670_v26, %v1383_v32  ;;  %v660_v55 = vmul.f32 %v659_v41, %v1383_v32 }
 0x237   :  { %v781_v12 = vadd.f32 0.0036580483, %v780_v25  ;;  %v792_v31 = vadd.f32 0.014752088, %v791_v29  ;;  %v615_v44 = vadd.f32 %v614_v30, %v1074_v43  ;;  %v1402_v35 = vmin.f32 %v696_v34, 16.0 }
 0x238   :  { %v672_v57 = vadd.f32 0.014752088, %v671_v20  ;;  %v661_v11 = vadd.f32 0.0036580483, %v660_v55 }
 0x239   :  { %v793_v27 = vmul.f32 %v792_v31, %v1385_v60  ;;  %v1405_v3 = vadd.f32 %v637_v36, %v615_v44  ;;  %v698_v37 = vmul.f32 2.1237322e-06, %v1402_v35  ;;  %v709_v38 = vmul.f32 3.8918573e-05, %v1402_v35 }
 0x23a   :  { %v673_v39 = vmul.f32 %v672_v57, %v1383_v32  ;;  %v782_v42 = vmul.f32 %v781_v12, %v1385_v60  ;;  %v662_v23 = vmul.f32 %v661_v11, %v1383_v32 }
 0x23b   :  { %v794_v6 = vadd.f32 0.112945676, %v793_v27  ;;  %v1413_v43 = vmul.f32 0.70710677, %v1405_v3  ;;  %v699_v8 = vadd.f32 0.00028619796, %v698_v37 }
 0x23c   :  { %v710_v53 = vadd.f32 0.001143296, %v709_v38  ;;  %v674_v47 = vadd.f32 0.112945676, %v673_v39  ;;  %v783_v2 = vadd.f32 0.05243302, %v782_v42 }
 0x23d   :  { %v795_v45 = vmul.f32 %v794_v6, %v1385_v60  ;;  %v736_v46 = vmul.f32 %v1413_v43, %v1413_v43  ;;  %v700_v49 = vmul.f32 %v699_v8, %v1402_v35  ;;  %v663_v36 = vadd.f32 0.05243302, %v662_v23 }
 0x23e   :  { %v711_v50 = vmul.f32 %v710_v53, %v1402_v35  ;;  %v675_v52 = vmul.f32 %v674_v47, %v1383_v32  ;;  %v784_v63 = vmul.f32 %v783_v2, %v1385_v60 }
 0x23f   :  { %v796_v33 = vadd.f32 0.4994258, %v795_v45  ;;  %v1419_v54 = vmin.f32 %v736_v46, 16.0  ;;  %v701_v21 = vadd.f32 0.0036580483, %v700_v49  ;;  %v664_v41 = vmul.f32 %v663_v36, %v1383_v32 }
 0x240   :  { %v712_v24 = vadd.f32 0.014752088, %v711_v50  ;;  %v676_v51 = vadd.f32 0.4994258, %v675_v52  ;;  %v785_v28 = vadd.f32 0.18741608, %v784_v63 }
 0x241   :  { %v797_v7 = vmul.f32 %v796_v33, %v1385_v60  ;;  %v738_v56 = vmul.f32 2.1237322e-06, %v1419_v54  ;;  %v749_v17 = vmul.f32 3.8918573e-05, %v1419_v54  ;;  %v702_v18 = vmul.f32 %v701_v21, %v1402_v35 }
 0x242   :  { %v713_v62 = vmul.f32 %v712_v24, %v1402_v35  ;;  %v677_v48 = vmul.f32 %v676_v51, %v1383_v32  ;;  %v786_v29 = vmul.f32 %v785_v28, %v1385_v60 }
 0x243   :  { %v798_v61 = vadd.f32 1.0, %v797_v7  ;;  %v739_v58 = vadd.f32 0.00028619796, %v738_v56  ;;  %v750_v0 = vadd.f32 0.001143296, %v749_v17 }
 0x244   :  { %v714_v15 = vadd.f32 0.112945676, %v713_v62  ;;  %v1432_v16 = vadd.f32 1.0, %v677_v48  ;;  %v703_v12 = vadd.f32 0.05243302, %v702_v18 }
 0x245   :  { %914 = vrcp.f32 %v798_v61  ;;  %v740_v13 = vmul.f32 %v739_v58, %v1419_v54  ;;  %v751_v14 = vmul.f32 %v750_v0, %v1419_v54  ;;  %v787_v37 = vadd.f32 1.1283791, %v786_v29 }
 0x246   :  { %v715_v22 = vmul.f32 %v714_v15, %v1402_v35  ;;  %916 = vrcp.f32 %v1432_v16  ;;  %v810_v38 = vand.u32 2147483648, %v798_v61  ;;  %v808_v6 = vand.u32 2147483647, %v798_v61 }
 0x247   :  { %v752_v19 = vadd.f32 0.014752088, %v751_v14  ;;  %v741_v26 = vadd.f32 0.0036580483, %v740_v13  ;;  %v704_v8 = vmul.f32 %v703_v12, %v1402_v35  ;;  %vm804_vm5 = vweird.f32 %v798_v61 }
 0x248   :  { %v716_v30 = vadd.f32 0.4994258, %v715_v22  ;;  %v811_v2 = vor.u32 1.1754944e-38, %v810_v38  ;;  %v788_v50 = vmul.f32 %v787_v37, %v1377_v10  ;;  %vm809_vm7 = vcmp.eq.f32.partialorder %v808_v6, 8.507059e+37 }
 0x249   :  { %v753_v34 = vmul.f32 %v752_v19, %v1419_v54  ;;  %v742_v27 = vmul.f32 %v741_v26, %v1419_v54  ;;  %v705_v24 = vadd.f32 0.18741608, %v704_v8  ;;  %v665_v56 = vadd.f32 0.18741608, %v664_v41 }
 0x24a   :  { %v717_v44 = vmul.f32 %v716_v30, %v1402_v35  ;;  %v651_v0 = vmul.f32 0.5, %v1371_v5  ;;  %v688_v15 = vand.u32 2147483647, %v1432_v16  ;;  %vm684_vm10 = vweird.f32 %v1432_v16 }
 0x24b   :  { %v915_v25 = vpop.eup %914  ;;  %v754_v31 = vadd.f32 0.112945676, %v753_v34  ;;  %v743_v47 = vadd.f32 0.05243302, %v742_v27  ;;  %v706_v10 = vmul.f32 %v705_v24, %v1402_v35  ;;  %v666_v48 = vmul.f32 %v665_v56, %v1383_v32 }
 0x24c   :  { %v800_v20 = vmul.f32 %v915_v25, %v798_v61  ;;  %v1442_v40 = vpop.eup %916  ;;  %v718_v42 = vadd.f32 1.0, %v717_v44  ;;  %vm805_vm4 = vweird.f32 %v915_v25  ;;  %v690_v32 = vand.u32 2147483648, %v1432_v16 }
 0x24d   :  { %v755_v39 = vmul.f32 %v754_v31, %v1419_v54  ;;  %v680_v45 = vmul.f32 %v1442_v40, %v1432_v16  ;;  %vm806_vm6 = vmor %vm804_vm5, %vm805_vm4  ;;  %v744_v51 = vmul.f32 %v743_v47, %v1419_v54  ;;  %vm685_vm8 = vweird.f32 %v1442_v40 }
 0x24e   :  { %v801_v57 = vsub.f32 1.0, %v800_v20  ;;  %918 = vrcp.f32 %v718_v42  ;;  %v728_v28 = vand.u32 2147483647, %v718_v42  ;;  %v730_v14 = vand.u32 2147483648, %v718_v42  ;;  %vm1464_vm12 = vmor %vm684_vm10, %vm685_vm8 }
 0x24f   :  { %v756_v53 = vadd.f32 0.4994258, %v755_v39  ;;  %v681_v7 = vsub.f32 1.0, %v680_v45  ;;  %v745_v11 = vadd.f32 0.18741608, %v744_v51  ;;  %vm724_vm11 = vweird.f32 %v718_v42 }
 0x250   :  { %v802_v60 = vmul.f32 %v915_v25, %v801_v57  ;;  %v707_v5 = vadd.f32 1.1283791, %v706_v10  ;;  %v667_v34 = vadd.f32 1.1283791, %v666_v48  ;;  %v731_v30 = vor.u32 1.1754944e-38, %v730_v14 }
 0x251   :  { %v757_v33 = vmul.f32 %v756_v53, %v1419_v54  ;;  %v682_v58 = vmul.f32 %v1442_v40, %v681_v7  ;;  %v746_v35 = vmul.f32 %v745_v11, %v1419_v54  ;;  %vm689_vm14 = vcmp.eq.f32.partialorder %v688_v15, 8.507059e+37 }
 0x252   :  { %v803_v46 = vadd.f32 %v915_v25, %v802_v60  ;;  %vm729_vm15 = vcmp.eq.f32.partialorder %v728_v28, 8.507059e+37  ;;  %v708_v16 = vmul.f32 %v707_v5, %v1394_v59  ;;  %v691_v36 = vor.u32 1.1754944e-38, %v690_v32 }
 0x253   :  { %v758_v55 = vadd.f32 1.0, %v757_v33  ;;  %v683_v22 = vadd.f32 %v1442_v40, %v682_v58  ;;  %v747_v57 = vadd.f32 1.1283791, %v746_v35  ;;  %v668_v39 = vmul.f32 %v667_v34, %v1374_v9 }
 0x254   :  { %v807_v52 = vsel %vm806_vm6, %v915_v25, %v803_v46  ;;  %v919_v63 = vpop.eup %918  ;;  %v649_v9 = vmul.f32 0.5, %v1390_v1 }
 0x255   :  { %v812_v49 = vsel %vm809_vm7, %v811_v2, %v807_v52  ;;  %920 = vrcp.f32 %v758_v55  ;;  %v720_v62 = vmul.f32 %v919_v63, %v718_v42  ;;  %vm725_vm9 = vweird.f32 %v919_v63 }
 0x256   :  { %v813_v17 = vmul.f32 %v812_v49, %v788_v50  ;;  %vm726_vm13 = vmor %vm724_vm11, %vm725_vm9  ;;  %v687_v54 = vsel %vm1464_vm12, %v1442_v40, %v683_v22  ;;  %v770_v31 = vand.u32 2147483648, %v758_v55  ;;  %v768_v37 = vand.u32 2147483647, %v758_v55 }
 0x257   :  { %v721_v13 = vsub.f32 1.0, %v720_v62  ;;  %v692_v38 = vsel %vm689_vm14, %v691_v36, %v687_v54  ;;  %vm764_vm1 = vweird.f32 %v758_v55  ;;  %v748_v45 = vmul.f32 %v747_v57, %v1413_v43 }
 0x258   :  { %v883_v61 = vclamps-f32 %v813_v17, 1.0  ;;  %v771_v6 = vor.u32 1.1754944e-38, %v770_v31  ;;  %vm769_vm4 = vcmp.eq.f32.partialorder %v768_v37, 8.507059e+37  ;;  %v693_v59 = vmul.f32 %v692_v38, %v668_v39 }
 0x259   :  { %v722_v19 = vmul.f32 %v919_v63, %v721_v13  ;;  %v650_v2 = vmul.f32 0.5, %v1405_v3  ;;  %v648_v49 = vmul.f32 0.5, %v1369_v4  ;;  %v829_v3 = vpop.permute.xlu1 %828 }
 0x25a   :  { %v819_v21 = vadd.f32 1.0, %v883_v61  ;;  %v880_v47 = vclamps-f32 %v693_v59, 1.0 }
 0x25b   :  { %v921_v23 = vpop.eup %920  ;;  %v723_v25 = vadd.f32 %v919_v63, %v722_v19 }
 0x25c   :  { %v823_v18 = vmul.f32 %v819_v21, %v651_v0  ;;  %v760_v26 = vmul.f32 %v921_v23, %v758_v55  ;;  %vm765_vm0 = vweird.f32 %v921_v23  ;;  %v816_v7 = vadd.f32 1.0, %v880_v47  ;;  %v824_v55 = vld [vmem:[%s1494_s9] sm:$0x3] }
 0x25d   :  { %v727_v12 = vsel %vm726_vm13, %v919_v63, %v723_v25  ;;  %vm766_vm3 = vmor %vm764_vm1, %vm765_vm0 }
 0x25e   :  { %846 = vmatpush.msra.mxu3 %v823_v18  ;;  %v761_v20 = vsub.f32 1.0, %v760_v26  ;;  %v732_v44 = vsel %vm729_vm15, %v731_v30, %v727_v12  ;;  %v820_v24 = vmul.f32 %v816_v7, %v648_v49 }
 0x25f   :  { %v733_v60 = vmul.f32 %v732_v44, %v708_v16 }
 0x260   :  { %v762_v27 = vmul.f32 %v921_v23, %v761_v20 }
 0x261   :  { %v881_v41 = vclamps-f32 %v733_v60, 1.0 }
 0x262   :  { %v763_v42 = vadd.f32 %v921_v23, %v762_v27 }
 0x263   :  { %v817_v50 = vadd.f32 1.0, %v881_v41 }
 0x264   :  { %v767_v40 = vsel %vm766_vm3, %v921_v23, %v763_v42 }
 0x265   :  { %v772_v8 = vsel %vm769_vm4, %v771_v6, %v767_v40  ;;  %v821_v43 = vmul.f32 %v817_v50, %v649_v9 }
 0x266   :  { %v773_v53 = vmul.f32 %v772_v8, %v748_v45 }
 0x268   :  { %v882_v46 = vclamps-f32 %v773_v53, 1.0 }
 0x26a   :  { %v818_v33 = vadd.f32 1.0, %v882_v46 }
 0x26c   :  { %v822_v52 = vmul.f32 %v818_v33, %v650_v2 }
 0x26e   :  { %847 = vmatpush.msra.mxu3 %v822_v52 }
 0x270   :  { %848 = vmatpush.msra.mxu3 %v821_v43 }
 0x272   :  { %849 = vmatpush.msra.mxu3 %v820_v24 }
 0x273   :  { %884 = vmatmul.msk.f32.vlgmr.msra.gmra.mxu3 %vm329_vm2, %v824_v55 }
 0x2f6   :  { %v851_v56 = vpop.f32.mrf.mxu3 }
 0x2f7   :  { %v852_v17 = vadd.f32 %v851_v56, %v829_v3 }
 0x2f9   :  { %854 = vst [vmem:[%s1495_s11] sm:$0x3] %v852_v17 }

</bundles_post_ra>
